<compile_context>
chip_gen: v7x
topology: tpu7x:2x2x1
jax: 0.10.0
libtpu: 0.0.40
codegen_flags: <defaults>
</compile_context>

<pallas_src>
import functools

import jax
import jax.numpy as jnp
from jax.experimental import pallas as pl
from jax.experimental.pallas import tpu as pltpu


def _round_up(x, m):
    return (x + m - 1) // m * m


# ---------------------------------------------------------------------------
# Kernel: fused 3-matmul MLP over a single bf16 weight slab.
#   t_ref : (bb, text_dim)   f32 text features
#   i_ref : (bb, image_dim)  f32 image features
#   w_ref : (rows, D) bf16   [Wt | Wi | bias row | W2' | W3']  (16-row aligned)
#   o_ref : (bb, D)   f32    lane-dense; cols [:num_classes] are the logits
# Static slab row offsets are bound via functools.partial.
# ---------------------------------------------------------------------------
def _fused_mlp_kernel(t_ref, i_ref, w_ref, o_ref, *, i0, rb, r2, r3):
    td = t_ref.shape[1]
    idm = i_ref.shape[1]
    D = w_ref.shape[1]
    bf16 = jnp.bfloat16

    t = t_ref[...].astype(bf16)
    im = i_ref[...].astype(bf16)

    # Layer 1: fused text_fc + image_fc (disjoint output columns) + bias row.
    # The bias row also plants a constant 1.0 at lane 2H (the "bias lane").
    z = jnp.maximum(
        jnp.dot(t, w_ref[0:td, :], preferred_element_type=jnp.float32)
        + jnp.dot(im, w_ref[i0:i0 + idm, :], preferred_element_type=jnp.float32)
        + w_ref[rb:rb + 1, :].astype(jnp.float32),
        0.0)

    # Layer 2: classifier Linear(2H -> H) with the attention branch folded in.
    # Its bias rides on z's constant-1 lane as a plain weight row (no add).
    h = jnp.maximum(
        jnp.dot(z.astype(bf16), w_ref[r2:r2 + D, :],
                preferred_element_type=jnp.float32),
        0.0)

    # Layer 3: classifier Linear(H -> num_classes); bias rides on h's 1-lane.
    o_ref[...] = jnp.dot(h.astype(bf16), w_ref[r3:r3 + D, :],
                         preferred_element_type=jnp.float32).astype(o_ref.dtype)


# ---------------------------------------------------------------------------
# Offline folding + packing of the PyTorch-style parameters into ONE slab.
# ---------------------------------------------------------------------------
def pack_params(p, text_dim, image_dim, hidden_dim, num_classes,
                weight_dtype=jnp.bfloat16):
    H = hidden_dim
    # +1 guarantees a free lane at column 2H for the constant-1 bias lane.
    D = _round_up(max(2 * H + 1, num_classes), 128)
    C = 2 * H                                   # constant-1 lane index

    # Fold the static attention chain (seq_len==1 => attn = im_hid@wvo + bvo).
    wvo = p["wv"] @ p["wo"]                     # (H, H)
    bvo = p["bv"] @ p["wo"] + p["bo"]           # (1, H)
    w1t, w1a = p["w1"][:H, :], p["w1"][H:, :]
    wim_h = wvo @ w1a                           # (H, H)
    b1f = p["b1"] + bvo @ w1a                   # (1, H)  (classifier L1 bias)

    ALIGN = 16                                  # bf16 sublane tile height
    i0 = _round_up(text_dim, ALIGN)             # start of Wi section
    rb = i0 + _round_up(image_dim, ALIGN)       # bias row (16-row block)
    r2 = rb + ALIGN                             # start of W2'
    r3 = r2 + D                                 # start of W3'
    rows = r3 + D

    w = jnp.zeros((rows, D), jnp.float32)
    # Layer 1: text_fc -> cols [:H], image_fc -> cols [H:2H].
    w = w.at[0:text_dim, 0:H].set(p["wt"])
    w = w.at[i0:i0 + image_dim, H:2 * H].set(p["wi"])
    # Layer-1 bias row + constant-1 lane at column 2H.
    b1row = jnp.zeros((D,), jnp.float32)
    b1row = b1row.at[0:H].set(p["bt"][0]).at[H:2 * H].set(p["bi"][0])
    b1row = b1row.at[C].set(1.0)
    w = w.at[rb, :].set(b1row)
    # Layer 2: h = relu(t@w1t + im_hid@wim_h + b1f); bias via constant lane.
    w = w.at[r2:r2 + H, 0:H].set(w1t)
    w = w.at[r2 + H:r2 + 2 * H, 0:H].set(wim_h)
    w = w.at[r2 + C, 0:H].set(b1f[0])
    w = w.at[r2 + C, C].set(1.0)                # propagate constant-1 lane
    # Layer 3: logits = h @ w2 + b2; bias via constant lane.
    w = w.at[r3:r3 + H, 0:num_classes].set(p["w2"])
    w = w.at[r3 + C, 0:num_classes].set(p["b2"][0])

    return dict(w=w.astype(weight_dtype),
                text_dim=text_dim, image_dim=image_dim,
                hidden_dim=H, num_classes=num_classes, D=D,
                i0=i0, rb=rb, r2=r2, r3=r3)


# ---------------------------------------------------------------------------
# Wrapper: feed text/image straight into the kernel; batch-tile only if needed.
# ---------------------------------------------------------------------------
def multimodal_classifier2(text, image, packed, *, block_b=1024):
    td, idm = packed["text_dim"], packed["image_dim"]
    NC, D = packed["num_classes"], packed["D"]
    w = packed["w"]
    B = text.shape[0]

    kernel = functools.partial(
        _fused_mlp_kernel, i0=packed["i0"], rb=packed["rb"],
        r2=packed["r2"], r3=packed["r3"])

    # Tile policy: pad B only to a multiple of 8; never pad a whole extra tile
    # for awkward sizes; use >=2 tiles for large batches so the "parallel"
    # axis shards across v7x's 2 TensorCores.  block_b=1024 keeps per-step
    # VMEM well under v5e's 16 MiB default scoped limit.
    B8 = _round_up(B, 8)
    n_tiles = max(pl.cdiv(B8, block_b), 2 if B8 >= 512 else 1)
    bb = _round_up(pl.cdiv(B8, n_tiles), 8)
    B_pad = bb * n_tiles
    if B_pad > B:
        text = jnp.pad(text, ((0, B_pad - B), (0, 0)))
        image = jnp.pad(image, ((0, B_pad - B), (0, 0)))

    out_shape = jax.ShapeDtypeStruct((B_pad, D), jnp.float32)
    cost = pl.CostEstimate(
        flops=2 * B_pad * D * (td + idm + 1 + 2 * D),
        transcendentals=0,
        bytes_accessed=int(B_pad * (td + idm) * 4 + w.size * 2
                           + B_pad * D * 4))

    if n_tiles == 1:
        # Single-step case (e.g. B=8): grid-less call, no pipeline prologue,
        # whole operands VMEM-resident, zero wrapper pad ops when B % 8 == 0.
        out = pl.pallas_call(kernel, out_shape=out_shape,
                             cost_estimate=cost)(text, image, w)
    else:
        try:   # constant index map -> single-buffer the resident weight slab
            w_spec = pl.BlockSpec(w.shape, lambda i: (0, 0),
                                  pipeline_mode=pl.Buffered(1))
        except (TypeError, AttributeError):   # older Pallas: default buffering
            w_spec = pl.BlockSpec(w.shape, lambda i: (0, 0))
        out = pl.pallas_call(
            kernel,
            out_shape=out_shape,
            grid=(n_tiles,),
            in_specs=[
                pl.BlockSpec((bb, td), lambda i: (i, 0)),     # text block
                pl.BlockSpec((bb, idm), lambda i: (i, 0)),    # image block
                w_spec,                                       # weight slab
            ],
            out_specs=pl.BlockSpec((bb, D), lambda i: (i, 0)),
            compiler_params=pltpu.CompilerParams(
                dimension_semantics=("parallel",)),
            cost_estimate=cost,
        )(text, image, w)

    # TODO(synk): downstream consumers could take the padded (B_pad, D) slab
    # directly and skip this slice in the overhead-bound small-batch regime.
    return out[:B, :NC]


# ---------------------------------------------------------------------------
# Deterministic PyTorch-Linear-style init of the *raw* (unfolded) params.
# ---------------------------------------------------------------------------
def init_params(key, text_dim, image_dim, hidden_dim, num_classes):
    ks = jax.random.split(key, 6)

    def lin(k, din, dout):
        bound = 1.0 / float(din) ** 0.5
        kw, kb = jax.random.split(k)
        w = jax.random.uniform(kw, (din, dout), jnp.float32, -bound, bound)
        b = jax.random.uniform(kb, (1, dout), jnp.float32, -bound, bound)
        return w, b

    wt, bt = lin(ks[0], text_dim, hidden_dim)           # text_fc
    wi, bi = lin(ks[1], image_dim, hidden_dim)          # image_fc
    wv, bv = lin(ks[2], hidden_dim, hidden_dim)         # MHA in_proj V slice
    wo, bo = lin(ks[3], hidden_dim, hidden_dim)         # MHA out_proj
    w1, b1 = lin(ks[4], 2 * hidden_dim, hidden_dim)     # classifier layer 1
    w2, b2 = lin(ks[5], hidden_dim, num_classes)        # classifier layer 2
    return dict(wt=wt, bt=bt, wi=wi, bi=bi, wv=wv, bv=bv, wo=wo, bo=bo,
                w1=w1, b1=b1, w2=w2, b2=b2)


def reference(text, image, p):
    """Pure-JAX f32 reference of the PyTorch eval-mode forward (multimodal)."""
    t = jnp.maximum(text @ p["wt"] + p["bt"], 0.0)
    im = jnp.maximum(image @ p["wi"] + p["bi"], 0.0)
    # seq_len == 1 => softmax over the single key == 1 => attn = out_proj(V)
    attn = (im @ p["wv"] + p["bv"]) @ p["wo"] + p["bo"]
    feats = jnp.concatenate([t, attn], axis=1)
    h = jnp.maximum(feats @ p["w1"] + p["b1"], 0.0)
    return h @ p["w2"] + p["b2"]


if __name__ == "__main__":
    B, TEXT_DIM, IMAGE_DIM, HIDDEN, NUM_CLASSES = 8, 48, 64, 32, 10  # heads=4 | HIDDEN
    key = jax.random.PRNGKey(0)
    kt, ki, kp = jax.random.split(key, 3)
    text = jax.random.normal(kt, (B, TEXT_DIM), jnp.float32)
    image = jax.random.normal(ki, (B, IMAGE_DIM), jnp.float32)

    params = init_params(kp, TEXT_DIM, IMAGE_DIM, HIDDEN, NUM_CLASSES)
    packed = pack_params(params, TEXT_DIM, IMAGE_DIM, HIDDEN, NUM_CLASSES)

    out = jax.block_until_ready(multimodal_classifier2(text, image, packed))
    ref = reference(text, image, params)

    assert out.shape == (B, NUM_CLASSES)
    # bf16 weight slab -> tolerance loosened vs the f32 reference (per review).
    assert jnp.allclose(out, ref, atol=3e-2, rtol=3e-2), "kernel/reference mismatch"
    print("KERNEL_OK")
</pallas_src>

<mosaic_0001>
module attributes {stable_mosaic.version = 11 : i64} {
  func.func @_fused_mlp_kernel(%arg0: memref<8x48xf32, #tpu.memory_space<vmem>>, %arg1: memref<8x64xf32, #tpu.memory_space<vmem>>, %arg2: memref<384x128xbf16, #tpu.memory_space<vmem>>, %arg3: memref<8x128xf32, #tpu.memory_space<vmem>>) attributes {dimension_semantics = [], scalar_prefetch = 0 : i64, scratch_operands = 0 : i64, tpu.core_type = #tpu.core_type<tc>} {
    %c0 = arith.constant 0 : index
    %c0_0 = arith.constant 0 : index
    %0 = vector.load %arg0[%c0, %c0_0] : memref<8x48xf32, #tpu.memory_space<vmem>>, vector<8x48xf32>
    %1 = arith.truncf %0 : vector<8x48xf32> to vector<8x48xbf16>
    %c0_1 = arith.constant 0 : index
    %c0_2 = arith.constant 0 : index
    %2 = vector.load %arg1[%c0_1, %c0_2] : memref<8x64xf32, #tpu.memory_space<vmem>>, vector<8x64xf32>
    %3 = arith.truncf %2 : vector<8x64xf32> to vector<8x64xbf16>
    %c0_3 = arith.constant 0 : index
    %c0_4 = arith.constant 0 : index
    %4 = vector.load %arg2[%c0_3, %c0_4] : memref<384x128xbf16, #tpu.memory_space<vmem>>, vector<48x128xbf16>
    %cst = arith.constant dense<0.000000e+00> : vector<8x128xf32>
    %5 = tpu.matmul %1, %4, %cst {dimension_numbers = #tpu.dot_dimension_numbers<[1], [0], [0], [1], [0, 0, 1, 1], [], []>} : vector<8x48xbf16>, vector<48x128xbf16>, vector<8x128xf32> -> vector<8x128xf32>
    %c48 = arith.constant 48 : index
    %c0_5 = arith.constant 0 : index
    %6 = vector.load %arg2[%c48, %c0_5] : memref<384x128xbf16, #tpu.memory_space<vmem>>, vector<64x128xbf16>
    %cst_6 = arith.constant dense<0.000000e+00> : vector<8x128xf32>
    %7 = tpu.matmul %3, %6, %cst_6 {dimension_numbers = #tpu.dot_dimension_numbers<[1], [0], [0], [1], [0, 0, 1, 1], [], []>} : vector<8x64xbf16>, vector<64x128xbf16>, vector<8x128xf32> -> vector<8x128xf32>
    %8 = arith.addf %5, %7 : vector<8x128xf32>
    %c112 = arith.constant 112 : index
    %c0_7 = arith.constant 0 : index
    %9 = vector.load %arg2[%c112, %c0_7] : memref<384x128xbf16, #tpu.memory_space<vmem>>, vector<1x128xbf16>
    %10 = arith.extf %9 : vector<1x128xbf16> to vector<1x128xf32>
    %11 = vector.broadcast %10 : vector<1x128xf32> to vector<8x128xf32>
    %12 = arith.addf %8, %11 : vector<8x128xf32>
    %cst_8 = arith.constant 0.000000e+00 : f32
    %13 = vector.broadcast %cst_8 : f32 to vector<8x128xf32>
    %14 = arith.maximumf %12, %13 : vector<8x128xf32>
    %15 = arith.truncf %14 : vector<8x128xf32> to vector<8x128xbf16>
    %c128 = arith.constant 128 : index
    %c0_9 = arith.constant 0 : index
    %16 = vector.load %arg2[%c128, %c0_9] : memref<384x128xbf16, #tpu.memory_space<vmem>>, vector<128x128xbf16>
    %cst_10 = arith.constant dense<0.000000e+00> : vector<8x128xf32>
    %17 = tpu.matmul %15, %16, %cst_10 {dimension_numbers = #tpu.dot_dimension_numbers<[1], [0], [0], [1], [0, 0, 1, 1], [], []>} : vector<8x128xbf16>, vector<128x128xbf16>, vector<8x128xf32> -> vector<8x128xf32>
    %cst_11 = arith.constant 0.000000e+00 : f32
    %18 = vector.broadcast %cst_11 : f32 to vector<8x128xf32>
    %19 = arith.maximumf %17, %18 : vector<8x128xf32>
    %20 = arith.truncf %19 : vector<8x128xf32> to vector<8x128xbf16>
    %c256 = arith.constant 256 : index
    %c0_12 = arith.constant 0 : index
    %21 = vector.load %arg2[%c256, %c0_12] : memref<384x128xbf16, #tpu.memory_space<vmem>>, vector<128x128xbf16>
    %cst_13 = arith.constant dense<0.000000e+00> : vector<8x128xf32>
    %22 = tpu.matmul %20, %21, %cst_13 {dimension_numbers = #tpu.dot_dimension_numbers<[1], [0], [0], [1], [0, 0, 1, 1], [], []>} : vector<8x128xbf16>, vector<128x128xbf16>, vector<8x128xf32> -> vector<8x128xf32>
    %c0_14 = arith.constant 0 : index
    %c0_15 = arith.constant 0 : index
    %23 = vector.load %arg3[%c0_14, %c0_15] : memref<8x128xf32, #tpu.memory_space<vmem>>, vector<8x128xf32>
    tpu.vector_store %arg3[%c0_14, %c0_15], %22 {strides = array<i32>} : memref<8x128xf32, #tpu.memory_space<vmem>>, vector<8x128xf32>,
    return
  }
}

</mosaic_0001>

<bundles_post_ra>
// kernel: tpu_custom_call.1
= control target key start
LH: loop header
LB: loop body
LE: loop exit
PB: predicated region body
PF: predicated region fallthrough
CT: control target
= control target key end

     0   :  { %8 = vsyncpa [#allocation3], 0  ;;  %s783_s0 = inlined_call_operand.hbm [shape: f32[8,48], index: 0, kind: input, shape index: {}]   ;;  %s784_s1 = inlined_call_operand.hbm [shape: f32[8,64], index: 1, kind: input, shape index: {}]   ;;  %s785_s2 = inlined_call_operand.hbm [shape: bf16[384,128], index: 2, kind: input, shape index: {}]   ;;  %s786_s3 = inlined_call_operand.hbm [shape: f32[8,128], index: 3, kind: output, shape index: {}]  }
   0x1   :  { %9 = vsyncpa [#allocation6], 0 }
   0x2   :  { %10 = vsyncpa [#allocation4], 0  ;;  %s676_s12 = smov [#allocation5]   ;;  %s677_s14 = smov [#allocation2]  }
   0x3   :  { %s27_s13 = sshll.u32 %s676_s12, 4  ;;  %s17_s15 = sshll.u32 %s677_s14, 4  ;;  %s28_s13 = int_to_ptr.vmem [resolvable:$true] %s27_s13  ;;  %s18_s15 = int_to_ptr.vmem [resolvable:$true] %s17_s15 }
   0x4   :  { %s582_s18 = scalar_lea.hbm %s784_s1, 128 }
   0x5   :  { %p583_p0 = scmp.ne.s32.totalorder %s784_s1, %s582_s18  ;;  %p586_p1 = scmp.lt.u32.totalorder %s582_s18, %s784_s1 }
   0x7   :  { %p588_p2 = pnand %p586_p1, %p583_p0 }
   0x9   :  { %591 = shalt.err (!%p588_p2)
}
   0xa   :  { %s592_s23 = scalar_lea.vmem %s28_s13, 128  ;;  %p597_p4 = scmp.lt.s32.totalorder %s28_s13, %s28_s13 }
   0xb   :  { %p593_p3 = scmp.ne.s32.totalorder %s28_s13, %s592_s23  ;;  %p598_p5 = scmp.lt.s32.totalorder %s592_s23, %s592_s23 }
   0xd   :  { %p599_p6 = por %p598_p5, %p597_p4 }
   0xf   :  { %p600_p7 = pnand %p599_p6, %p593_p3 }
  0x11   :  { %603 = shalt.err (!%p600_p7)
}
  0x12   :  { %30 = dma.hbm_to_vmem [thread:$0]  %s784_s1, 128, %s28_s13, [#allocation6]  }
  0x13   :  { %s604_s28 = scalar_lea.hbm %s783_s0, 128 }
  0x14   :  { %p605_p8 = scmp.ne.s32.totalorder %s783_s0, %s604_s28  ;;  %p608_p9 = scmp.lt.u32.totalorder %s604_s28, %s783_s0 }
  0x16   :  { %p610_p10 = pnand %p608_p9, %p605_p8 }
  0x18   :  { %613 = shalt.err (!%p610_p10)
}
  0x19   :  { %s614_s6 = scalar_lea.vmem %s18_s15, 128  ;;  %p619_p12 = scmp.lt.s32.totalorder %s18_s15, %s18_s15 }
  0x1a   :  { %p615_p11 = scmp.ne.s32.totalorder %s18_s15, %s614_s6  ;;  %p620_p13 = scmp.lt.s32.totalorder %s614_s6, %s614_s6 }
  0x1c   :  { %p621_p0 = por %p620_p13, %p619_p12 }
  0x1e   :  { %p622_p1 = pnand %p621_p0, %p615_p11 }
  0x20   :  { %625 = shalt.err (!%p622_p1)
}
  0x21   :  { %20 = dma.hbm_to_vmem [thread:$0]  %s783_s0, 128, %s18_s15, [#allocation3]  }
  0x22   :  { %s678_s8 = smov [#allocation7]   ;;  %s626_s12 = scalar_lea.hbm %s785_s2, 3072 }
  0x23   :  { %s36_s9 = sshll.u32 %s678_s8, 4  ;;  %p627_p2 = scmp.ne.s32.totalorder %s785_s2, %s626_s12  ;;  %s37_s9 = int_to_ptr.vmem [resolvable:$true] %s36_s9 }
  0x24   :  { %p630_p3 = scmp.lt.u32.totalorder %s626_s12, %s785_s2 }
  0x26   :  { %p632_p4 = pnand %p630_p3, %p627_p2 }
  0x28   :  { %635 = shalt.err (!%p632_p4)
}
  0x29   :  { %s636_s18 = scalar_lea.vmem %s37_s9, 3072  ;;  %p641_p6 = scmp.lt.s32.totalorder %s37_s9, %s37_s9 }
  0x2a   :  { %p637_p5 = scmp.ne.s32.totalorder %s37_s9, %s636_s18  ;;  %p642_p7 = scmp.lt.s32.totalorder %s636_s18, %s636_s18 }
  0x2c   :  { %p643_p8 = por %p642_p7, %p641_p6 }
  0x2e   :  { %p644_p9 = pnand %p643_p8, %p637_p5 }
  0x30   :  { %647 = shalt.err (!%p644_p9)
}
  0x31   :  { %s679_s0 = smov 64   ;;  %s680_s15 = smov 4  }
  0x32   :  { %42 = dma.hbm_to_vmem [thread:$0]  %s785_s2, 3072, %s37_s9, [#allocation6], %s679_s0, %s679_s0, %s680_s15  }
  0x33   :  { %670 = dma.done.wait [#allocation3], 128  }
  0x34   :  { %671 = vsyncadd [#allocation3], 4294967168 }
  0x35   :  { %672 = dma.done.wait [#allocation6], 3200  }
  0x36   :  { %673 = vsyncadd [#allocation6], 4294964096  ;;  %v681_v0 = vmov 0.0   ;;  %vm682_vm0 = vmmov 0   ;;  %v559_v1 = vld [vmem:[#allocation7 + $0x18] sm:$0xff]   ;;  %v560_v2 = vld [vmem:[#allocation7] sm:$0xff]   ;;  %v203_v27 = vlaneseq }
  0x37   :  { %489 = vmatprep.subr.bf16.mxu0 %v681_v0  ;;  %501 = vmatprep.subr.bf16.mxu1 %v681_v0  ;;  %v561_v3 = vld [vmem:[#allocation7 + $0x20] sm:$0xff]   ;;  %v562_v4 = vld [vmem:[#allocation7 + $0x8] sm:$0xff]   ;;  %v564_v6 = vld [vmem:[#allocation7 + $0x10] sm:$0xff]   ;;  %vm157_vm1 = vcmask 392192   ;;  %vm95_vm2 = vcmask 523264   ;;  %s683_s2 = smov [#allocation8]  }
  0x38   :  { %507 = vmatprep.mubr.msk.bf16.mxu1 %vm682_vm0, %v681_v0  ;;  %497 = vmatprep.mubr.msk.bf16.mxu0 %vm682_vm0, %v681_v0  ;;  %v563_v5 = vld [vmem:[#allocation7 + $0x28] sm:$0xff]   ;;  %v53_v7 = vld [vmem:[#allocation2] sm:$0xff]  ;;  %v55_v10 = vld [vmem:[#allocation5] sm:$0xff]  ;;  %v204_v28 = vshrl.u32 %v203_v27, 7  ;;  %s427_s21 = sshll.u32 %s683_s2, 4  ;;  %s428_s21 = int_to_ptr.vmem [resolvable:$true] %s427_s21 }
  0x39   :  { %490 = vmatpush3.bf16.msra.mxu0 %v559_v1  ;;  %502 = vmatpush3.bf16.msra.mxu1 %v560_v2  ;;  %v565_v8 = vld [vmem:[#allocation7 + $0x30] sm:$0xff]   ;;  %v54_v9 = vpack.c.bf16 %v53_v7, %v53_v7  ;;  %v566_v11 = vld [vmem:[#allocation7 + $0x40] sm:$0xff]   ;;  %v56_v12 = vpack.c.bf16 %v55_v10, %v55_v10  ;;  %v567_v13 = vld [vmem:[#allocation7 + $0x48] sm:$0xff]   ;;  %s648_s22 = scalar_lea.vmem %s428_s21, 128  ;;  %p653_p11 = scmp.lt.s32.totalorder %s428_s21, %s428_s21 }
  0x3a   :  { %491 = vmatprep.subr.bf16.mxu0 %v681_v0  ;;  %503 = vmatprep.subr.bf16.mxu1 %v681_v0  ;;  %v568_v14 = vld [vmem:[#allocation7 + $0x50] sm:$0xff]   ;;  %v569_v15 = vld [vmem:[#allocation7 + $0x58] sm:$0xff]   ;;  %v570_v16 = vld [vmem:[#allocation7 + $0x60] sm:$0xff]   ;;  %v205_v31 = vsub.s32 0, %v204_v28  ;;  %p649_p10 = scmp.ne.s32.totalorder %s428_s21, %s648_s22  ;;  %p654_p12 = scmp.lt.s32.totalorder %s648_s22, %s648_s22 }
  0x3b   :  { %v571_v17 = vld [vmem:[#allocation7 + $0x68] sm:$0xff]   ;;  %v572_v18 = vld [vmem:[#allocation7 + $0x70] sm:$0xff]   ;;  %v573_v19 = vld [vmem:[#allocation7 + $0x78] sm:$0xff]  }
  0x3c   :  { %v574_v20 = vld [vmem:[#allocation7 + $0x80] sm:$0xff]   ;;  %v575_v21 = vld [vmem:[#allocation7 + $0x88] sm:$0xff]   ;;  %v576_v22 = vld [vmem:[#allocation7 + $0x90] sm:$0xff]   ;;  %p655_p13 = por %p654_p12, %p653_p11 }
  0x3d   :  { %492 = vmatpush3.bf16.msra.mxu0 %v561_v3  ;;  %504 = vmatpush3.bf16.msra.mxu1 %v562_v4  ;;  %v577_v23 = vld [vmem:[#allocation7 + $0x98] sm:$0xff]   ;;  %v578_v24 = vld [vmem:[#allocation7 + $0xa0] sm:$0xff]   ;;  %v579_v25 = vld [vmem:[#allocation7 + $0xa8] sm:$0xff]  }
  0x3e   :  { %493 = vmatprep.subr.bf16.mxu0 %v681_v0  ;;  %505 = vmatprep.subr.bf16.mxu1 %v681_v0  ;;  %v580_v26 = vld [vmem:[#allocation7 + $0xb0] sm:$0xff]   ;;  %v201_v29 = vld [vmem:[#allocation7 + $0x38] sm:$0x1]  ;;  %p656_p0 = pnand %p655_p13, %p649_p10 }
  0x3f   :  { %v202_v30 = vunpack.c.l.bf16 %v201_v29  ;;  %v581_v45 = vld [vmem:[#allocation7 + $0xb8] sm:$0xff]  }
  0x41   :  { %494 = vmatpush3.bf16.msra.mxu0 %v563_v5  ;;  %506 = vmatpush3.bf16.msra.mxu1 %v564_v6  ;;  %v206_v35 = vrot.slane %v202_v30, %v205_v31 }
  0x42   :  { %495 = vmatprep.subr.bf16.mxu0 %v681_v0  ;;  %511 = vmatprep.subr.bf16.mxu1 %v681_v0 }
  0x44   :  { %508 = vmatmul.mubr.msk.bf16.vlgmr.msra.gmra.mrb[0].mxu1 %vm157_vm1, %v54_v9 }
  0x45   :  { %496 = vmatpush3.bf16.msra.mxu0 %v565_v8  ;;  %512 = vmatpush3.bf16.msra.mxu1 %v566_v11 }
  0x46   :  { %527 = vmatprep.mubr.msk.bf16.mxu1 %vm682_vm0, %v681_v0  ;;  %513 = vmatprep.subr.bf16.mxu1 %v681_v0 }
  0x47   :  { %531 = vmatprep.subr.bf16.mxu0 %v681_v0 }
  0x48   :  { %498 = vmatmul.mubr.msk.bf16.vlgmr.msra.gmra.mrb[0].mxu0 %vm95_vm2, %v56_v12 }
  0x49   :  { %547 = vmatprep.mubr.msk.bf16.mxu0 %vm682_vm0, %v681_v0  ;;  %514 = vmatpush3.bf16.msra.mxu1 %v567_v13 }
  0x4a   :  { %515 = vmatprep.subr.bf16.mxu1 %v681_v0  ;;  %532 = vmatpush3.bf16.msra.mxu0 %v574_v20 }
  0x4b   :  { %533 = vmatprep.subr.bf16.mxu0 %v681_v0 }
  0x4d   :  { %516 = vmatpush3.bf16.msra.mxu1 %v568_v14 }
  0x4e   :  { %517 = vmatprep.subr.bf16.mxu1 %v681_v0  ;;  %534 = vmatpush3.bf16.msra.mxu0 %v575_v21 }
  0x4f   :  { %535 = vmatprep.subr.bf16.mxu0 %v681_v0 }
  0x51   :  { %518 = vmatpush3.bf16.msra.mxu1 %v569_v15 }
  0x52   :  { %519 = vmatprep.subr.bf16.mxu1 %v681_v0  ;;  %536 = vmatpush3.bf16.msra.mxu0 %v576_v22 }
  0x53   :  { %537 = vmatprep.subr.bf16.mxu0 %v681_v0 }
  0x55   :  { %520 = vmatpush3.bf16.msra.mxu1 %v570_v16 }
  0x56   :  { %521 = vmatprep.subr.bf16.mxu1 %v681_v0  ;;  %538 = vmatpush3.bf16.msra.mxu0 %v577_v23 }
  0x57   :  { %539 = vmatprep.subr.bf16.mxu0 %v681_v0 }
  0x59   :  { %522 = vmatpush3.bf16.msra.mxu1 %v571_v17 }
  0x5a   :  { %523 = vmatprep.subr.bf16.mxu1 %v681_v0  ;;  %540 = vmatpush3.bf16.msra.mxu0 %v578_v24 }
  0x5b   :  { %541 = vmatprep.subr.bf16.mxu0 %v681_v0 }
  0x5d   :  { %524 = vmatpush3.bf16.msra.mxu1 %v572_v18 }
  0x5e   :  { %525 = vmatprep.subr.bf16.mxu1 %v681_v0  ;;  %542 = vmatpush3.bf16.msra.mxu0 %v579_v25 }
  0x5f   :  { %543 = vmatprep.subr.bf16.mxu0 %v681_v0 }
  0x61   :  { %526 = vmatpush3.bf16.msra.mxu1 %v573_v19 }
  0x62   :  { %544 = vmatpush3.bf16.msra.mxu0 %v580_v26 }
  0x63   :  { %545 = vmatprep.subr.bf16.mxu0 %v681_v0 }
  0x66   :  { %546 = vmatpush3.bf16.msra.mxu0 %v581_v45 }
 0x117   :  { %v195_v32 = vpop.f32.mrb[0].mxu1 }
 0x118   :  { %v509_v33 = vpop.f32.mrb[1].mxu1 }
 0x119   :  { %v198_v34 = vpop.f32.mrb[2].mxu1 }
 0x11a   :  { %v510_v37 = vpop.f32.mrb[3].mxu1 }
 0x11b   :  { %v133_v36 = vpop.f32.mrb[0].mxu0 }
 0x11c   :  { %v196_v38 = vadd.f32 %v195_v32, %v133_v36  ;;  %v499_v39 = vpop.f32.mrb[1].mxu0 }
 0x11d   :  { %v136_v40 = vpop.f32.mrb[2].mxu0 }
 0x11e   :  { %v207_v41 = vadd.f32 %v206_v35, %v196_v38  ;;  %v500_v42 = vpop.f32.mrb[3].mxu0 }
 0x120   :  { %v208_v43 = vmax.f32 %v207_v41, 0.0 }
 0x122   :  { %v209_v44 = vpack.c.bf16 %v208_v43, %v208_v43 }
 0x124   :  { %528 = vmatmul.mubr.bf16.vlgmr.msra.gmra.mrb[4].mxu1 %v209_v44 }
 0x1f7   :  { %v308_v46 = vpop.f32.mrb[4].mxu1 }
 0x1f8   :  { %v314_v47 = vmax.f32 %v308_v46, 0.0  ;;  %v529_v48 = vpop.f32.mrb[5].mxu1 }
 0x1f9   :  { %v311_v49 = vpop.f32.mrb[6].mxu1 }
 0x1fa   :  { %v315_v50 = vpack.c.bf16 %v314_v47, %v314_v47  ;;  %v530_v51 = vpop.f32.mrb[7].mxu1 }
 0x1fc   :  { %548 = vmatmul.mubr.bf16.vlgmr.msra.gmra.mrb[4].mxu0 %v315_v50 }
 0x2cf   :  { %v414_v52 = vpop.f32.mrb[4].mxu0 }
 0x2d0   :  { %420 = vst [vmem:[#allocation8] sm:$0xff] %v414_v52  ;;  %v549_v53 = vpop.f32.mrb[5].mxu0 }
 0x2d1   :  { %v417_v54 = vpop.f32.mrb[6].mxu0 }
 0x2d2   :  { %659 = shalt.err (!%p656_p0)
}
 0x2d3   :  { %s660_s25 = scalar_lea.hbm %s786_s3, 128 }
 0x2d4   :  { %p661_p1 = scmp.ne.s32.totalorder %s786_s3, %s660_s25  ;;  %p664_p2 = scmp.lt.u32.totalorder %s660_s25, %s786_s3 }
 0x2d6   :  { %p666_p3 = pnand %p664_p2, %p661_p1 }
 0x2d8   :  { %669 = shalt.err (!%p666_p3)
}
 0x2d9   :  { %430 = dma.vmem_to_hbm [thread:$0]  %s428_s21, 128, %s786_s3, [#allocation4]   ;;  %v550_v55 = vpop.f32.mrb[7].mxu0 }
 0x2da   :  { %674 = dma.done.wait [#allocation4], 128  }
 0x2db   :  { %675 = vsyncadd [#allocation4], 4294967168 }
 0x2dc   :  { %434 = vsyncpa [#allocation3], 1 }
 0x2dd   :  { %435 = vsyncpa [#allocation6], 1 }
 0x2de   :  { %436 = vsyncpa [#allocation4], 1 }

</bundles_post_ra>
